<compile_context>
chip_gen: v6e
topology: v6e:2x2x1
jax: 0.10.0
libtpu: 0.0.40
codegen_flags: <defaults>
</compile_context>

<pallas_src>
import functools

import numpy as np
import jax
import jax.numpy as jnp
from jax.experimental import pallas as pl
from jax.experimental.pallas import tpu as pltpu


@functools.lru_cache(maxsize=8)
def _dft_weights(h, w):
    """Device-resident bf16 DFT weights for (h, w), cached across calls.

    Returns:
      kfwd   : (P, 2P)  [Kr | Ki]        x_flat @ kfwd  -> [Re(fft2) | Im(fft2)]
      kinv_r : (P, P)   Kr / P           Xr @ kinv_r + Xi @ kinv_i -> Re[ifft2]
      kinv_i : (P, P)   Ki / P
    with P = h*w and K = F_h (x) F_w (symmetric Kronecker DFT matrix).
    """
    jh = np.arange(h)
    jw = np.arange(w)
    fh = np.exp(-2j * np.pi * np.outer(jh, jh) / h)
    fw = np.exp(-2j * np.pi * np.outer(jw, jw) / w)
    k = np.kron(fh, fw)                                   # (P, P), symmetric
    kr = k.real.astype(np.float32)
    ki = k.imag.astype(np.float32)
    p = h * w
    kfwd = jnp.asarray(np.concatenate([kr, ki], axis=1), dtype=jnp.bfloat16)
    kinv_r = jnp.asarray(kr * (1.0 / p), dtype=jnp.bfloat16)   # 1/P folded in
    kinv_i = jnp.asarray(ki * (1.0 / p), dtype=jnp.bfloat16)
    return kfwd, kinv_r, kinv_i


def _pick_images_per_step(n, max_nb=256):
    """n must be a multiple of 8.  If the whole (padded) batch fits under
    max_nb, run it in a single grid step (weight-push amortization beats
    splitting across cores here); otherwise pick the largest multiple-of-8
    divisor of n that is <= max_nb."""
    if n <= max_nb:
        return n
    best = 8
    for d in range(8, max_nb + 1, 8):
        if n % d == 0:
            best = d
    return best


def _iteration_step_kernel(alpha_ref,                    # SMEM (1,) f32
                           z_ref, dirty_ref,             # VMEM (Nb, P) bf16
                           pr_ref, pi_ref,               # VMEM (Nb, P) f32
                           kfwd_ref,                     # VMEM (P, 2P) bf16
                           kinvr_ref, kinvi_ref,         # VMEM (P, P)  bf16
                           out_ref):                     # VMEM (Nb, P) f32
    nb, p = out_ref.shape
    alpha = alpha_ref[0]

    # ---- forward 2-D DFTs: two matmuls against the shared [Kr | Ki] weights.
    fd = jnp.dot(dirty_ref[...], kfwd_ref[...],
                 preferred_element_type=jnp.float32)      # (nb, 2p)
    fz = jnp.dot(z_ref[...], kfwd_ref[...],
                 preferred_element_type=jnp.float32)      # (nb, 2p)
    dr, di = fd[:, :p], fd[:, p:]
    zr, zi = fz[:, :p], fz[:, p:]

    pr = pr_ref[...]
    pi = pi_ref[...]

    # ---- Wiener update: pre-scale by 1/denominator so num_r/num_i are never
    # materialized (short live ranges, fewer spills).
    inv_den = pl.reciprocal(pr * pr + pi * pi + alpha, approx=True)
    a_r = pr * inv_den
    a_i = pi * inv_den
    a_a = alpha * inv_den
    xr = a_r * dr + a_i * di + a_a * zr
    xi = a_r * di - a_i * dr + a_a * zi

    # ---- Re[ifft2(X)] = Xr @ (Kr/P) + Xi @ (Ki/P) : two matmuls, no concat.
    out_ref[...] = (
        jnp.dot(xr.astype(jnp.bfloat16), kinvr_ref[...],
                preferred_element_type=jnp.float32)
        + jnp.dot(xi.astype(jnp.bfloat16), kinvi_ref[...],
                  preferred_element_type=jnp.float32))


def iteration_step(z, dirty, fpsf, alpha, *, max_images_per_step=256):
    """z, dirty: float (B, C, H, W); fpsf: complex64 (B, C, H, W); alpha scalar."""
    B, C, H, W = z.shape
    N, P = B * C, H * W
    if P > 1024:
        # TODO(synk): separable/rfft DFT path for large images.
        raise ValueError("Kronecker-DFT kernel is intended for small images (H*W <= 1024).")

    # z/dirty are only matmul LHS -> stream them as bf16 (halves their HBM
    # bytes, precision identical to the old in-kernel bf16 cast).
    z2 = z.reshape(N, P).astype(jnp.bfloat16)
    d2 = dirty.reshape(N, P).astype(jnp.bfloat16)
    # Keep Re/Im(fpsf) in f32: the Wiener denominator |fpsf|^2 + alpha needs it.
    pr = jnp.real(fpsf).reshape(N, P).astype(jnp.float32)
    pim = jnp.imag(fpsf).reshape(N, P).astype(jnp.float32)

    # Pad batch to a multiple of 8 (sublane friendly).  Padded rows have
    # pr = pi = 0 so the denominator is alpha > 0 -- no div-by-zero.
    n_pad = (-N) % 8
    if n_pad:
        z2 = jnp.pad(z2, ((0, n_pad), (0, 0)))
        d2 = jnp.pad(d2, ((0, n_pad), (0, 0)))
        pr = jnp.pad(pr, ((0, n_pad), (0, 0)))
        pim = jnp.pad(pim, ((0, n_pad), (0, 0)))
    Np = N + n_pad

    kfwd, kinv_r, kinv_i = _dft_weights(H, W)       # cached device constants
    alpha_arr = jnp.asarray([alpha], dtype=jnp.float32)

    nb = _pick_images_per_step(Np, max_images_per_step)
    grid = (Np // nb,)

    img_spec = pl.BlockSpec((nb, P), lambda i: (i, 0))
    w_fwd_spec = pl.BlockSpec((P, 2 * P), lambda i: (0, 0))
    w_inv_spec = pl.BlockSpec((P, P), lambda i: (0, 0))

    out = pl.pallas_call(
        _iteration_step_kernel,
        out_shape=jax.ShapeDtypeStruct((Np, P), jnp.float32),
        grid=grid,
        in_specs=[
            pl.BlockSpec(memory_space=pltpu.SMEM),    # alpha (scalar)
            img_spec,                                 # z        (bf16)
            img_spec,                                 # dirty    (bf16)
            img_spec,                                 # Re(fpsf) (f32)
            img_spec,                                 # Im(fpsf) (f32)
            w_fwd_spec,                               # [Kr | Ki]      bf16
            w_inv_spec,                               # Kr / P         bf16
            w_inv_spec,                               # Ki / P         bf16
        ],
        out_specs=img_spec,
        compiler_params=pltpu.CompilerParams(dimension_semantics=("parallel",)),
    )(alpha_arr, z2, d2, pr, pim, kfwd, kinv_r, kinv_i)

    if n_pad:
        out = out[:N]
    return out.reshape(B, C, H, W)


def _reference(z, dirty, fpsf, alpha):
    """Pure-JAX reference mirroring the PyTorch IterationStep exactly."""
    numerator = jnp.conj(fpsf) * jnp.fft.fft2(dirty) + alpha * jnp.fft.fft2(z)
    denominator = jnp.real(jnp.conj(fpsf) * fpsf) + alpha
    return jnp.real(jnp.fft.ifft2(numerator / denominator))


if __name__ == "__main__":
    # N = B*C = 16 images -> whole batch in one grid step (weight push amortized).
    B, C, H, W = 4, 4, 16, 16
    key = jax.random.PRNGKey(0)
    k1, k2, k3, k4 = jax.random.split(key, 4)

    z = jax.random.normal(k1, (B, C, H, W), dtype=jnp.float32)
    dirty = jax.random.normal(k2, (B, C, H, W), dtype=jnp.float32)
    # The module receives fpsf = fft2(ifftshift(psf)) pre-computed; a random
    # complex spectrum exercises the same math deterministically.
    fpsf = (jax.random.normal(k3, (B, C, H, W), dtype=jnp.float32)
            + 1j * jax.random.normal(k4, (B, C, H, W), dtype=jnp.float32)
            ).astype(jnp.complex64)
    # First-step alpha of the HQS schedule: falpha * SIGMA**2 / (f2 * SIGMA)**2.
    alpha = 2.8647 / 0.3391 ** 2   # ~24.9

    out = jax.block_until_ready(iteration_step(z, dirty, fpsf, alpha))
    ref = jax.block_until_ready(_reference(z, dirty, fpsf, alpha))
    np.testing.assert_allclose(np.asarray(out), np.asarray(ref),
                               rtol=2e-2, atol=2e-2)
    print("KERNEL_OK")
</pallas_src>

<mosaic_0001>
module attributes {stable_mosaic.version = 11 : i64} {
  func.func @_iteration_step_kernel(%arg0: i32, %arg1: memref<1xf32, #tpu.memory_space<smem>>, %arg2: memref<16x256xbf16, #tpu.memory_space<vmem>>, %arg3: memref<16x256xbf16, #tpu.memory_space<vmem>>, %arg4: memref<16x256xf32, #tpu.memory_space<vmem>>, %arg5: memref<16x256xf32, #tpu.memory_space<vmem>>, %arg6: memref<256x512xbf16, #tpu.memory_space<vmem>>, %arg7: memref<256x256xbf16, #tpu.memory_space<vmem>>, %arg8: memref<256x256xbf16, #tpu.memory_space<vmem>>, %arg9: memref<16x256xf32, #tpu.memory_space<vmem>>) attributes {dimension_semantics = [#tpu.dimension_semantics<parallel>], iteration_bounds = array<i64: 1>, scalar_prefetch = 0 : i64, scratch_operands = 0 : i64, tpu.core_type = #tpu.core_type<tc>, window_params = [{transform_indices = @transform_0, window_bounds = array<i64: 1>}, {transform_indices = @transform_1, window_bounds = array<i64: 16, 256>}, {transform_indices = @transform_2, window_bounds = array<i64: 16, 256>}, {transform_indices = @transform_3, window_bounds = array<i64: 16, 256>}, {transform_indices = @transform_4, window_bounds = array<i64: 16, 256>}, {pipeline_mode = #tpu.pipeline_mode<synchronous>, transform_indices = @transform_5, window_bounds = array<i64: 256, 512>}, {pipeline_mode = #tpu.pipeline_mode<synchronous>, transform_indices = @transform_6, window_bounds = array<i64: 256, 256>}, {pipeline_mode = #tpu.pipeline_mode<synchronous>, transform_indices = @transform_7, window_bounds = array<i64: 256, 256>}, {transform_indices = @transform_8, window_bounds = array<i64: 16, 256>}]} {
    %c0 = arith.constant 0 : index
    %0 = memref.load %arg1[%c0] : memref<1xf32, #tpu.memory_space<smem>>
    %c0_0 = arith.constant 0 : index
    %c0_1 = arith.constant 0 : index
    %1 = vector.load %arg3[%c0_0, %c0_1] : memref<16x256xbf16, #tpu.memory_space<vmem>>, vector<16x256xbf16>
    %c0_2 = arith.constant 0 : index
    %c0_3 = arith.constant 0 : index
    %2 = vector.load %arg6[%c0_2, %c0_3] : memref<256x512xbf16, #tpu.memory_space<vmem>>, vector<256x512xbf16>
    %cst = arith.constant dense<0.000000e+00> : vector<16x512xf32>
    %3 = tpu.matmul %1, %2, %cst {dimension_numbers = #tpu.dot_dimension_numbers<[1], [0], [0], [1], [0, 0, 1, 1], [], []>} : vector<16x256xbf16>, vector<256x512xbf16>, vector<16x512xf32> -> vector<16x512xf32>
    %c0_4 = arith.constant 0 : index
    %c0_5 = arith.constant 0 : index
    %4 = vector.load %arg2[%c0_4, %c0_5] : memref<16x256xbf16, #tpu.memory_space<vmem>>, vector<16x256xbf16>
    %c0_6 = arith.constant 0 : index
    %c0_7 = arith.constant 0 : index
    %5 = vector.load %arg6[%c0_6, %c0_7] : memref<256x512xbf16, #tpu.memory_space<vmem>>, vector<256x512xbf16>
    %cst_8 = arith.constant dense<0.000000e+00> : vector<16x512xf32>
    %6 = tpu.matmul %4, %5, %cst_8 {dimension_numbers = #tpu.dot_dimension_numbers<[1], [0], [0], [1], [0, 0, 1, 1], [], []>} : vector<16x256xbf16>, vector<256x512xbf16>, vector<16x512xf32> -> vector<16x512xf32>
    %7 = vector.extract_strided_slice %3 {offsets = [0, 0], sizes = [16, 256], strides = [1, 1]} : vector<16x512xf32> to vector<16x256xf32>
    %8 = vector.extract_strided_slice %3 {offsets = [0, 256], sizes = [16, 256], strides = [1, 1]} : vector<16x512xf32> to vector<16x256xf32>
    %9 = vector.extract_strided_slice %6 {offsets = [0, 0], sizes = [16, 256], strides = [1, 1]} : vector<16x512xf32> to vector<16x256xf32>
    %10 = vector.extract_strided_slice %6 {offsets = [0, 256], sizes = [16, 256], strides = [1, 1]} : vector<16x512xf32> to vector<16x256xf32>
    %c0_9 = arith.constant 0 : index
    %c0_10 = arith.constant 0 : index
    %11 = vector.load %arg4[%c0_9, %c0_10] : memref<16x256xf32, #tpu.memory_space<vmem>>, vector<16x256xf32>
    %c0_11 = arith.constant 0 : index
    %c0_12 = arith.constant 0 : index
    %12 = vector.load %arg5[%c0_11, %c0_12] : memref<16x256xf32, #tpu.memory_space<vmem>>, vector<16x256xf32>
    %13 = arith.mulf %11, %11 : vector<16x256xf32>
    %14 = arith.mulf %12, %12 : vector<16x256xf32>
    %15 = arith.addf %13, %14 : vector<16x256xf32>
    %16 = vector.broadcast %0 : f32 to vector<16x256xf32>
    %17 = arith.addf %15, %16 : vector<16x256xf32>
    %18 = tpu.reciprocal %17 {approx = true} : vector<16x256xf32> -> vector<16x256xf32>
    %19 = arith.mulf %11, %18 : vector<16x256xf32>
    %20 = arith.mulf %12, %18 : vector<16x256xf32>
    %21 = vector.broadcast %0 : f32 to vector<16x256xf32>
    %22 = arith.mulf %21, %18 : vector<16x256xf32>
    %23 = arith.mulf %19, %7 : vector<16x256xf32>
    %24 = arith.mulf %20, %8 : vector<16x256xf32>
    %25 = arith.addf %23, %24 : vector<16x256xf32>
    %26 = arith.mulf %22, %9 : vector<16x256xf32>
    %27 = arith.addf %25, %26 : vector<16x256xf32>
    %28 = arith.mulf %19, %8 : vector<16x256xf32>
    %29 = arith.mulf %20, %7 : vector<16x256xf32>
    %30 = arith.subf %28, %29 : vector<16x256xf32>
    %31 = arith.mulf %22, %10 : vector<16x256xf32>
    %32 = arith.addf %30, %31 : vector<16x256xf32>
    %33 = arith.truncf %27 : vector<16x256xf32> to vector<16x256xbf16>
    %c0_13 = arith.constant 0 : index
    %c0_14 = arith.constant 0 : index
    %34 = vector.load %arg7[%c0_13, %c0_14] : memref<256x256xbf16, #tpu.memory_space<vmem>>, vector<256x256xbf16>
    %cst_15 = arith.constant dense<0.000000e+00> : vector<16x256xf32>
    %35 = tpu.matmul %33, %34, %cst_15 {dimension_numbers = #tpu.dot_dimension_numbers<[1], [0], [0], [1], [0, 0, 1, 1], [], []>} : vector<16x256xbf16>, vector<256x256xbf16>, vector<16x256xf32> -> vector<16x256xf32>
    %36 = arith.truncf %32 : vector<16x256xf32> to vector<16x256xbf16>
    %c0_16 = arith.constant 0 : index
    %c0_17 = arith.constant 0 : index
    %37 = vector.load %arg8[%c0_16, %c0_17] : memref<256x256xbf16, #tpu.memory_space<vmem>>, vector<256x256xbf16>
    %cst_18 = arith.constant dense<0.000000e+00> : vector<16x256xf32>
    %38 = tpu.matmul %36, %37, %cst_18 {dimension_numbers = #tpu.dot_dimension_numbers<[1], [0], [0], [1], [0, 0, 1, 1], [], []>} : vector<16x256xbf16>, vector<256x256xbf16>, vector<16x256xf32> -> vector<16x256xf32>
    %39 = arith.addf %35, %38 : vector<16x256xf32>
    %c0_19 = arith.constant 0 : index
    %c0_20 = arith.constant 0 : index
    %40 = vector.load %arg9[%c0_19, %c0_20] : memref<16x256xf32, #tpu.memory_space<vmem>>, vector<16x256xf32>
    tpu.vector_store %arg9[%c0_19, %c0_20], %39 {strides = array<i32>} : memref<16x256xf32, #tpu.memory_space<vmem>>, vector<16x256xf32>,
    return
  }
  func.func @transform_0(%arg0: i32) -> i32 {
    %c0_i32 = arith.constant 0 : i32
    %c0_i32_0 = arith.constant 0 : i32
    return %c0_i32 : i32
  }
  func.func @transform_1(%arg0: i32) -> (i32, i32) {
    %c0_i32 = arith.constant 0 : i32
    %c0_i32_0 = arith.constant 0 : i32
    return %arg0, %c0_i32 : i32, i32
  }
  func.func @transform_2(%arg0: i32) -> (i32, i32) {
    %c0_i32 = arith.constant 0 : i32
    %c0_i32_0 = arith.constant 0 : i32
    return %arg0, %c0_i32 : i32, i32
  }
  func.func @transform_3(%arg0: i32) -> (i32, i32) {
    %c0_i32 = arith.constant 0 : i32
    %c0_i32_0 = arith.constant 0 : i32
    return %arg0, %c0_i32 : i32, i32
  }
  func.func @transform_4(%arg0: i32) -> (i32, i32) {
    %c0_i32 = arith.constant 0 : i32
    %c0_i32_0 = arith.constant 0 : i32
    return %arg0, %c0_i32 : i32, i32
  }
  func.func @transform_5(%arg0: i32) -> (i32, i32) {
    %c0_i32 = arith.constant 0 : i32
    %c0_i32_0 = arith.constant 0 : i32
    %c0_i32_1 = arith.constant 0 : i32
    return %c0_i32, %c0_i32_0 : i32, i32
  }
  func.func @transform_6(%arg0: i32) -> (i32, i32) {
    %c0_i32 = arith.constant 0 : i32
    %c0_i32_0 = arith.constant 0 : i32
    %c0_i32_1 = arith.constant 0 : i32
    return %c0_i32, %c0_i32_0 : i32, i32
  }
  func.func @transform_7(%arg0: i32) -> (i32, i32) {
    %c0_i32 = arith.constant 0 : i32
    %c0_i32_0 = arith.constant 0 : i32
    %c0_i32_1 = arith.constant 0 : i32
    return %c0_i32, %c0_i32_0 : i32, i32
  }
  func.func @transform_8(%arg0: i32) -> (i32, i32) {
    %c0_i32 = arith.constant 0 : i32
    %c0_i32_0 = arith.constant 0 : i32
    return %arg0, %c0_i32 : i32, i32
  }
}

</mosaic_0001>

<bundles_post_ra>
// kernel: tpu_custom_call.1
= control target key start
LH: loop header
LB: loop body
LE: loop exit
PB: predicated region body
PF: predicated region fallthrough
CT: control target
= control target key end

     0   :  { %14 = vsyncpa [#allocation4], 0  ;;  %s2170_s0 = inlined_call_operand.<no memory space> [shape: f32[1], index: 0, kind: input, shape index: {}]   ;;  %s2171_s1 = inlined_call_operand.hbm [shape: bf16[16,256], index: 1, kind: input, shape index: {}]   ;;  %s2172_s2 = inlined_call_operand.hbm [shape: bf16[16,256], index: 2, kind: input, shape index: {}]   ;;  %s2173_s3 = inlined_call_operand.hbm [shape: f32[16,256], index: 3, kind: input, shape index: {}]   ;;  %s2174_s4 = inlined_call_operand.hbm [shape: f32[16,256], index: 4, kind: input, shape index: {}]   ;;  %s2175_s5 = inlined_call_operand.hbm [shape: bf16[256,512], index: 5, kind: input, shape index: {}]   ;;  %s2176_s6 = inlined_call_operand.hbm [shape: bf16[256,256], index: 6, kind: input, shape index: {}]   ;;  %s2177_s7 = inlined_call_operand.hbm [shape: bf16[256,256], index: 7, kind: input, shape index: {}]   ;;  %s2178_s8 = inlined_call_operand.hbm [shape: f32[16,256], index: 8, kind: output, shape index: {}]  }
   0x1   :  { %15 = vsyncpa [#allocation7], 0 }
   0x2   :  { %16 = vsyncpa [#allocation10], 0 }
   0x3   :  { %17 = vsyncpa [#allocation13], 0 }
   0x4   :  { %18 = vsyncpa [#allocation5], 0  ;;  %s1806_s27 = smov [#allocation6]  }
   0x5   :  { %s38_s28 = sshll.u32 %s1806_s27, 4  ;;  %s39_s28 = int_to_ptr.vmem [resolvable:$true] %s38_s28 }
   0x6   :  { %s1644_s29 = scalar_lea.vmem %s39_s28, 256  ;;  %p1649_p1 = scmp.lt.s32.totalorder %s39_s28, %s39_s28 }
   0x7   :  { %p1645_p0 = scmp.ne.s32.totalorder %s39_s28, %s1644_s29  ;;  %p1650_p2 = scmp.lt.s32.totalorder %s1644_s29, %s1644_s29 }
   0x9   :  { %p1651_p3 = por %p1650_p2, %p1649_p1 }
   0xb   :  { %p1652_p4 = pnand %p1651_p3, %p1645_p0 }
   0xd   :  { %1655 = shalt.err (!%p1652_p4)
}
   0xe   :  { %s1807_s30 = smov 128   ;;  %s1808_s9 = smov 8  }
   0xf   :  { %44 = dma.hbm_to_vmem [thread:$0]  %s2172_s2, 256, %s39_s28, [#allocation7], %s1807_s30, %s1807_s30, %s1808_s9  }
  0x10   :  { %s1809_s12 = smov [#allocation9]   ;;  %s1810_s14 = smov [#allocation12]  }
  0x11   :  { %s62_s13 = sshll.u32 %s1809_s12, 4  ;;  %s86_s15 = sshll.u32 %s1810_s14, 4  ;;  %s63_s13 = int_to_ptr.vmem [resolvable:$true] %s62_s13  ;;  %s87_s15 = int_to_ptr.vmem [resolvable:$true] %s86_s15 }
  0x12   :  { %s1664_s16 = scalar_lea.vmem %s63_s13, 512  ;;  %p1669_p6 = scmp.lt.s32.totalorder %s63_s13, %s63_s13 }
  0x13   :  { %p1665_p5 = scmp.ne.s32.totalorder %s63_s13, %s1664_s16  ;;  %p1670_p7 = scmp.lt.s32.totalorder %s1664_s16, %s1664_s16 }
  0x15   :  { %p1671_p8 = por %p1670_p7, %p1669_p6 }
  0x17   :  { %p1672_p9 = pnand %p1671_p8, %p1665_p5 }
  0x19   :  { %1675 = shalt.err (!%p1672_p9)
}
  0x1a   :  { %s1811_s17 = smov 256   ;;  %s1812_s18 = smov 16  }
  0x1b   :  { %68 = dma.hbm_to_vmem [thread:$0]  %s2174_s4, 512, %s63_s13, [#allocation10], %s1811_s17, %s1811_s17, %s1812_s18  }
  0x1c   :  { %s1684_s2 = scalar_lea.vmem %s87_s15, 4096  ;;  %p1689_p11 = scmp.lt.s32.totalorder %s87_s15, %s87_s15 }
  0x1d   :  { %p1685_p10 = scmp.ne.s32.totalorder %s87_s15, %s1684_s2  ;;  %p1690_p12 = scmp.lt.s32.totalorder %s1684_s2, %s1684_s2 }
  0x1f   :  { %p1691_p13 = por %p1690_p12, %p1689_p11 }
  0x21   :  { %p1692_p0 = pnand %p1691_p13, %p1685_p10 }
  0x23   :  { %1695 = shalt.err (!%p1692_p0)
}
  0x24   :  { %92 = dma.hbm_to_vmem [thread:$0]  %s2176_s6, 4096, %s87_s15, [#allocation13], %s1807_s30, %s1807_s30, %s1808_s9  }
  0x25   :  { %s1813_s23 = smov [#allocation3]   ;;  %s1814_s25 = smov [#allocation8]  }
  0x26   :  { %s26_s24 = sshll.u32 %s1813_s23, 4  ;;  %s50_s4 = sshll.u32 %s1814_s25, 4  ;;  %s27_s24 = int_to_ptr.vmem [resolvable:$true] %s26_s24  ;;  %s51_s4 = int_to_ptr.vmem [resolvable:$true] %s50_s4 }
  0x27   :  { %s1704_s26 = scalar_lea.vmem %s27_s24, 256  ;;  %p1709_p2 = scmp.lt.s32.totalorder %s27_s24, %s27_s24 }
  0x28   :  { %p1705_p1 = scmp.ne.s32.totalorder %s27_s24, %s1704_s26  ;;  %p1710_p3 = scmp.lt.s32.totalorder %s1704_s26, %s1704_s26 }
  0x2a   :  { %p1711_p4 = por %p1710_p3, %p1709_p2 }
  0x2c   :  { %p1712_p5 = pnand %p1711_p4, %p1705_p1 }
  0x2e   :  { %1715 = shalt.err (!%p1712_p5)
}
  0x2f   :  { %32 = dma.hbm_to_vmem [thread:$0]  %s2171_s1, 256, %s27_s24, [#allocation4], %s1807_s30, %s1807_s30, %s1808_s9  }
  0x30   :  { %s1724_s6 = scalar_lea.vmem %s51_s4, 512  ;;  %p1729_p7 = scmp.lt.s32.totalorder %s51_s4, %s51_s4 }
  0x31   :  { %p1725_p6 = scmp.ne.s32.totalorder %s51_s4, %s1724_s6  ;;  %p1730_p8 = scmp.lt.s32.totalorder %s1724_s6, %s1724_s6 }
  0x33   :  { %p1731_p9 = por %p1730_p8, %p1729_p7 }
  0x35   :  { %p1732_p10 = pnand %p1731_p9, %p1725_p6 }
  0x37   :  { %1735 = shalt.err (!%p1732_p10)
}
  0x38   :  { %56 = dma.hbm_to_vmem [thread:$0]  %s2173_s3, 512, %s51_s4, [#allocation7], %s1811_s17, %s1811_s17, %s1812_s18  }
  0x39   :  { %s1815_s11 = smov [#allocation11]   ;;  %s1816_s13 = smov [#allocation14]  }
  0x3a   :  { %s74_s12 = sshll.u32 %s1815_s11, 4  ;;  %s98_s1 = sshll.u32 %s1816_s13, 4  ;;  %s75_s12 = int_to_ptr.vmem [resolvable:$true] %s74_s12  ;;  %s99_s1 = int_to_ptr.vmem [resolvable:$true] %s98_s1 }
  0x3b   :  { %s1744_s14 = scalar_lea.vmem %s75_s12, 8192  ;;  %p1749_p12 = scmp.lt.s32.totalorder %s75_s12, %s75_s12 }
  0x3c   :  { %p1745_p11 = scmp.ne.s32.totalorder %s75_s12, %s1744_s14  ;;  %p1750_p13 = scmp.lt.s32.totalorder %s1744_s14, %s1744_s14 }
  0x3e   :  { %p1751_p0 = por %p1750_p13, %p1749_p12 }
  0x40   :  { %p1752_p1 = pnand %p1751_p0, %p1745_p11 }
  0x42   :  { %1755 = shalt.err (!%p1752_p1)
}
  0x43   :  { %80 = dma.hbm_to_vmem [thread:$0]  %s2175_s5, 8192, %s75_s12, [#allocation10], %s1811_s17, %s1811_s17, %s1812_s18  }
  0x44   :  { %s1764_s3 = scalar_lea.vmem %s99_s1, 4096  ;;  %p1769_p3 = scmp.lt.s32.totalorder %s99_s1, %s99_s1 }
  0x45   :  { %p1765_p2 = scmp.ne.s32.totalorder %s99_s1, %s1764_s3  ;;  %p1770_p4 = scmp.lt.s32.totalorder %s1764_s3, %s1764_s3 }
  0x47   :  { %p1771_p5 = por %p1770_p4, %p1769_p3 }
  0x49   :  { %p1772_p6 = pnand %p1771_p5, %p1765_p2 }
  0x4b   :  { %1775 = shalt.err (!%p1772_p6)
}
  0x4c   :  { %104 = dma.hbm_to_vmem [thread:$0]  %s2177_s7, 4096, %s99_s1, [#allocation13], %s1807_s30, %s1807_s30, %s1808_s9  }
  0x4d   :  { %1796 = dma.done.wait [#allocation4], 256  }
  0x4e   :  { %1797 = vsyncadd [#allocation4], 4294967040 }
  0x4f   :  { %1798 = dma.done.wait [#allocation7], 768  }
  0x50   :  { %1799 = vsyncadd [#allocation7], 4294966528 }
  0x51   :  { %1800 = dma.done.wait [#allocation10], 8704  }
  0x52   :  { %1801 = vsyncadd [#allocation10], 4294958592 }
  0x53   :  { %1802 = dma.done.wait [#allocation13], 8192  }
  0x54   :  { %1803 = vsyncadd [#allocation13], 4294959104  ;;  %v1905_v0 = vld [vmem:[#allocation11 + $0xe4] ss:$16 sps:$4 sm:$0xff]   ;;  %v1907_v1 = vld [vmem:[#allocation11 + $0xec] ss:$16 sps:$4 sm:$0xff]  }
  0x55   :  { %523 = vmatprep.subr.bf16.mxu0 %v1905_v0  ;;  %v1910_v2 = vld [vmem:[#allocation11 + $0xe0] ss:$16 sps:$4 sm:$0xff]   ;;  %v1912_v3 = vld [vmem:[#allocation11 + $0xe8] ss:$16 sps:$4 sm:$0xff]   ;;  %566 = vmatprep.subr.bf16.mxu1 %v1907_v1  ;;  %v1915_v4 = vld [vmem:[#allocation11 + $0xc4] ss:$16 sps:$4 sm:$0xff]  }
  0x56   :  { %524 = vmatpush1.bf16.msra.mxu0 %v1910_v2  ;;  %567 = vmatpush1.bf16.msra.mxu1 %v1912_v3  ;;  %v1919_v5 = vld [vmem:[#allocation11 + $0xcc] ss:$16 sps:$4 sm:$0xff]   ;;  %v1921_v6 = vld [vmem:[#allocation11 + $0xc0] ss:$16 sps:$4 sm:$0xff]   ;;  %v1924_v7 = vld [vmem:[#allocation11 + $0xc8] ss:$16 sps:$4 sm:$0xff]  }
  0x57   :  { %525 = vmatprep.subr.bf16.mxu0 %v1915_v4  ;;  %568 = vmatprep.subr.bf16.mxu1 %v1919_v5  ;;  %v1927_v8 = vld [vmem:[#allocation11 + $0xa4] ss:$16 sps:$4 sm:$0xff]   ;;  %v1929_v9 = vld [vmem:[#allocation11 + $0xac] ss:$16 sps:$4 sm:$0xff]   ;;  %v1931_v10 = vld [vmem:[#allocation11 + $0xa0] ss:$16 sps:$4 sm:$0xff]  }
  0x58   :  { %v1933_v11 = vld [vmem:[#allocation11 + $0xa8] ss:$16 sps:$4 sm:$0xff]   ;;  %v1937_v12 = vld [vmem:[#allocation11 + $0x84] ss:$16 sps:$4 sm:$0xff]   ;;  %v1941_v13 = vld [vmem:[#allocation11 + $0x8c] ss:$16 sps:$4 sm:$0xff]  }
  0x59   :  { %v1943_v14 = vld [vmem:[#allocation11 + $0x80] ss:$16 sps:$4 sm:$0xff]   ;;  %v1947_v15 = vld [vmem:[#allocation11 + $0x88] ss:$16 sps:$4 sm:$0xff]   ;;  %v1949_v16 = vld [vmem:[#allocation11 + $0x64] ss:$16 sps:$4 sm:$0xff]  }
  0x5a   :  { %526 = vmatpush1.bf16.msra.mxu0 %v1921_v6  ;;  %569 = vmatpush1.bf16.msra.mxu1 %v1924_v7  ;;  %v1953_v17 = vld [vmem:[#allocation11 + $0x6c] ss:$16 sps:$4 sm:$0xff]   ;;  %v1955_v18 = vld [vmem:[#allocation11 + $0x60] ss:$16 sps:$4 sm:$0xff]   ;;  %v1957_v19 = vld [vmem:[#allocation11 + $0x68] ss:$16 sps:$4 sm:$0xff]  }
  0x5b   :  { %527 = vmatprep.subr.bf16.mxu0 %v1927_v8  ;;  %570 = vmatprep.subr.bf16.mxu1 %v1929_v9  ;;  %v1961_v20 = vld [vmem:[#allocation11 + $0x44] ss:$16 sps:$4 sm:$0xff]   ;;  %v1965_v21 = vld [vmem:[#allocation11 + $0x4c] ss:$16 sps:$4 sm:$0xff]   ;;  %v1967_v22 = vld [vmem:[#allocation11 + $0x40] ss:$16 sps:$4 sm:$0xff]  }
  0x5c   :  { %v1971_v23 = vld [vmem:[#allocation11 + $0x48] ss:$16 sps:$4 sm:$0xff]   ;;  %v1973_v24 = vld [vmem:[#allocation11 + $0x24] ss:$16 sps:$4 sm:$0xff]   ;;  %v1977_v25 = vld [vmem:[#allocation11 + $0x2c] ss:$16 sps:$4 sm:$0xff]  }
  0x5d   :  { %v1979_v26 = vld [vmem:[#allocation11 + $0x20] ss:$16 sps:$4 sm:$0xff]   ;;  %v1981_v27 = vld [vmem:[#allocation11 + $0x28] ss:$16 sps:$4 sm:$0xff]   ;;  %v1985_v28 = vld [vmem:[#allocation11 + $0x4] ss:$16 sps:$4 sm:$0xff]  }
  0x5e   :  { %528 = vmatpush1.bf16.msra.mxu0 %v1931_v10  ;;  %571 = vmatpush1.bf16.msra.mxu1 %v1933_v11  ;;  %v1989_v29 = vld [vmem:[#allocation11 + $0xc] ss:$16 sps:$4 sm:$0xff]   ;;  %v1991_v30 = vld [vmem:[#allocation11] ss:$16 sps:$4 sm:$0xff]   ;;  %v1995_v31 = vld [vmem:[#allocation11 + $0x8] ss:$16 sps:$4 sm:$0xff]  }
  0x5f   :  { %529 = vmatprep.subr.bf16.mxu0 %v1937_v12  ;;  %572 = vmatprep.subr.bf16.mxu1 %v1941_v13  ;;  %v1997_v32 = vld [vmem:[#allocation11 + $0x1e4] ss:$16 sps:$4 sm:$0xff]   ;;  %v2001_v33 = vld [vmem:[#allocation11 + $0x1ec] ss:$16 sps:$4 sm:$0xff]   ;;  %v2003_v34 = vld [vmem:[#allocation11 + $0x1e0] ss:$16 sps:$4 sm:$0xff]  }
  0x60   :  { %v2005_v35 = vld [vmem:[#allocation11 + $0x1e8] ss:$16 sps:$4 sm:$0xff]   ;;  %v2009_v36 = vld [vmem:[#allocation11 + $0x1c4] ss:$16 sps:$4 sm:$0xff]   ;;  %v2013_v37 = vld [vmem:[#allocation11 + $0x1cc] ss:$16 sps:$4 sm:$0xff]  }
  0x61   :  { %v2015_v38 = vld [vmem:[#allocation11 + $0x1c0] ss:$16 sps:$4 sm:$0xff]   ;;  %v2019_v39 = vld [vmem:[#allocation11 + $0x1c8] ss:$16 sps:$4 sm:$0xff]   ;;  %v2021_v40 = vld [vmem:[#allocation11 + $0x1a4] ss:$16 sps:$4 sm:$0xff]  }
  0x62   :  { %530 = vmatpush1.bf16.msra.mxu0 %v1943_v14  ;;  %573 = vmatpush1.bf16.msra.mxu1 %v1947_v15  ;;  %v2025_v41 = vld [vmem:[#allocation11 + $0x1ac] ss:$16 sps:$4 sm:$0xff]   ;;  %v2027_v42 = vld [vmem:[#allocation11 + $0x1a0] ss:$16 sps:$4 sm:$0xff]   ;;  %v2029_v43 = vld [vmem:[#allocation11 + $0x1a8] ss:$16 sps:$4 sm:$0xff]  }
  0x63   :  { %531 = vmatprep.subr.bf16.mxu0 %v1949_v16  ;;  %574 = vmatprep.subr.bf16.mxu1 %v1953_v17  ;;  %v2033_v44 = vld [vmem:[#allocation11 + $0x184] ss:$16 sps:$4 sm:$0xff]   ;;  %v2037_v45 = vld [vmem:[#allocation11 + $0x18c] ss:$16 sps:$4 sm:$0xff]   ;;  %v2039_v46 = vld [vmem:[#allocation11 + $0x180] ss:$16 sps:$4 sm:$0xff]  }
  0x64   :  { %v2041_v47 = vld [vmem:[#allocation11 + $0x188] ss:$16 sps:$4 sm:$0xff]   ;;  %v1528_v48 = vld [vmem:[#allocation6 + $0x4] ss:$8 sps:$4 sm:$0xff]   ;;  %v2051_v51 = vld [vmem:[#allocation11 + $0x160] ss:$16 sps:$4 sm:$0xff]  }
  0x65   :  { %v2045_v49 = vld [vmem:[#allocation11 + $0x164] ss:$16 sps:$4 sm:$0xff]   ;;  %v2049_v50 = vld [vmem:[#allocation11 + $0x16c] ss:$16 sps:$4 sm:$0xff]   ;;  %v2053_v52 = vld [vmem:[#allocation11 + $0x168] ss:$16 sps:$4 sm:$0xff]   ;;  %555 = vmatprep.mubr.bf16.mxu0 %v1528_v48  ;;  %598 = vmatprep.mubr.bf16.mxu1 %v1528_v48 }
  0x66   :  { %532 = vmatpush1.bf16.msra.mxu0 %v1955_v18  ;;  %575 = vmatpush1.bf16.msra.mxu1 %v1957_v19  ;;  %v2055_v53 = vld [vmem:[#allocation11 + $0x144] ss:$16 sps:$4 sm:$0xff]   ;;  %v2057_v54 = vld [vmem:[#allocation11 + $0x14c] ss:$16 sps:$4 sm:$0xff]   ;;  %v2063_v55 = vld [vmem:[#allocation11 + $0x140] ss:$16 sps:$4 sm:$0xff]  }
  0x67   :  { %533 = vmatprep.subr.bf16.mxu0 %v1961_v20  ;;  %576 = vmatprep.subr.bf16.mxu1 %v1965_v21  ;;  %2181 = vst [vmem:[#allocation21_spill] sm:$0xff] %v2057_v54  ;;  %v2065_v56 = vld [vmem:[#allocation11 + $0x148] ss:$16 sps:$4 sm:$0xff]   ;;  %v2067_v57 = vld [vmem:[#allocation11 + $0x124] ss:$16 sps:$4 sm:$0xff]  }
  0x68   :  { %v2069_v58 = vld [vmem:[#allocation11 + $0x12c] ss:$16 sps:$4 sm:$0xff]   ;;  %v2075_v59 = vld [vmem:[#allocation11 + $0x120] ss:$16 sps:$4 sm:$0xff]   ;;  %v2077_v60 = vld [vmem:[#allocation11 + $0x128] ss:$16 sps:$4 sm:$0xff]  }
  0x69   :  { %2182 = vst [vmem:[#allocation22_spill] sm:$0xff] %v2069_v58  ;;  %v2079_v61 = vld [vmem:[#allocation11 + $0x104] ss:$16 sps:$4 sm:$0xff]   ;;  %v2081_v62 = vld [vmem:[#allocation11 + $0x10c] ss:$16 sps:$4 sm:$0xff]  }
  0x6a   :  { %534 = vmatpush1.bf16.msra.mxu0 %v1967_v22  ;;  %577 = vmatpush1.bf16.msra.mxu1 %v1971_v23  ;;  %v2087_v63 = vld [vmem:[#allocation11 + $0x100] ss:$16 sps:$4 sm:$0xff]   ;;  %v2089_v48 = vld [vmem:[#allocation11 + $0x108] ss:$16 sps:$4 sm:$0xff]  }
  0x6b   :  { %535 = vmatprep.subr.bf16.mxu0 %v1973_v24  ;;  %578 = vmatprep.subr.bf16.mxu1 %v1977_v25 }
  0x6e   :  { %536 = vmatpush1.bf16.msra.mxu0 %v1979_v26  ;;  %579 = vmatpush1.bf16.msra.mxu1 %v1981_v27 }
  0x6f   :  { %537 = vmatprep.subr.bf16.mxu0 %v1985_v28  ;;  %580 = vmatprep.subr.bf16.mxu1 %v1989_v29 }
  0x72   :  { %538 = vmatpush1.bf16.msra.mxu0 %v1991_v30  ;;  %581 = vmatpush1.bf16.msra.mxu1 %v1995_v31 }
  0x73   :  { %539 = vmatprep.subr.bf16.mxu0 %v1997_v32  ;;  %582 = vmatprep.subr.bf16.mxu1 %v2001_v33 }
  0x76   :  { %540 = vmatpush2.bf16.msra.mxu0 %v2003_v34  ;;  %583 = vmatpush2.bf16.msra.mxu1 %v2005_v35 }
  0x77   :  { %541 = vmatprep.subr.bf16.mxu0 %v2009_v36  ;;  %584 = vmatprep.subr.bf16.mxu1 %v2013_v37 }
  0x7a   :  { %542 = vmatpush2.bf16.msra.mxu0 %v2015_v38  ;;  %585 = vmatpush2.bf16.msra.mxu1 %v2019_v39 }
  0x7b   :  { %543 = vmatprep.subr.bf16.mxu0 %v2021_v40  ;;  %586 = vmatprep.subr.bf16.mxu1 %v2025_v41 }
  0x7e   :  { %544 = vmatpush2.bf16.msra.mxu0 %v2027_v42  ;;  %587 = vmatpush2.bf16.msra.mxu1 %v2029_v43 }
  0x7f   :  { %545 = vmatprep.subr.bf16.mxu0 %v2033_v44  ;;  %588 = vmatprep.subr.bf16.mxu1 %v2037_v45 }
  0x82   :  { %546 = vmatpush2.bf16.msra.mxu0 %v2039_v46  ;;  %589 = vmatpush2.bf16.msra.mxu1 %v2041_v47 }
  0x83   :  { %547 = vmatprep.subr.bf16.mxu0 %v2045_v49  ;;  %590 = vmatprep.subr.bf16.mxu1 %v2049_v50 }
  0x86   :  { %548 = vmatpush2.bf16.msra.mxu0 %v2051_v51  ;;  %591 = vmatpush2.bf16.msra.mxu1 %v2053_v52 }
  0x87   :  { %549 = vmatprep.subr.bf16.mxu0 %v2055_v53  ;;  %592 = vmatprep.subr.bf16.mxu1 %v2057_v54  ;;  %v1526_v54 = vld [vmem:[#allocation6] ss:$8 sps:$4 sm:$0xff]  }
  0x8a   :  { %550 = vmatpush2.bf16.msra.mxu0 %v2063_v55  ;;  %593 = vmatpush2.bf16.msra.mxu1 %v2065_v56 }
  0x8b   :  { %551 = vmatprep.subr.bf16.mxu0 %v2067_v57  ;;  %594 = vmatprep.subr.bf16.mxu1 %v2069_v58  ;;  %v1531_v58 = vld [vmem:[#allocation3 + $0x4] ss:$8 sps:$4 sm:$0xff]  }
  0x8e   :  { %552 = vmatpush2.bf16.msra.mxu0 %v2075_v59  ;;  %595 = vmatpush2.bf16.msra.mxu1 %v2077_v60 }
  0x8f   :  { %553 = vmatprep.subr.bf16.mxu0 %v2079_v61  ;;  %596 = vmatprep.subr.bf16.mxu1 %v2081_v62 }
  0x92   :  { %554 = vmatpush2.bf16.msra.mxu0 %v2087_v63  ;;  %597 = vmatpush2.bf16.msra.mxu1 %v2089_v48 }
  0x93   :  { %621 = vmatprep.subr.bf16.mxu0 %v1905_v0  ;;  %664 = vmatprep.subr.bf16.mxu1 %v1907_v1  ;;  %v2183_v0 = vld [vmem:[#allocation21_spill] sm:$0xff]  ;;  %v2184_v1 = vld [vmem:[#allocation22_spill] sm:$0xff] }
  0x95   :  { %556 = vmatmul.mubr.bf16.vlgmr.msra.gmra.mxu0 %v1526_v54  ;;  %599 = vmatmul.mubr.bf16.vlgmr.msra.gmra.mxu1 %v1526_v54  ;;  %v1604_v54 = vld [vmem:[#allocation14 + $0xb0] ss:$8 sps:$4 sm:$0xff]  }
  0x96   :  { %622 = vmatpush1.bf16.msra.mxu0 %v1910_v2  ;;  %665 = vmatpush1.bf16.msra.mxu1 %v1912_v3  ;;  %v1529_v2 = vld [vmem:[#allocation3] ss:$8 sps:$4 sm:$0xff]   ;;  %v1532_v3 = vld [vmem:[#allocation14 + $0x70] ss:$8 sps:$4 sm:$0xff]  }
  0x97   :  { %623 = vmatprep.subr.bf16.mxu0 %v1915_v4  ;;  %666 = vmatprep.subr.bf16.mxu1 %v1919_v5  ;;  %v1534_v4 = vld [vmem:[#allocation14 + $0x74] ss:$8 sps:$4 sm:$0xff]   ;;  %v1535_v5 = vld [vmem:[#allocation12 + $0x70] ss:$8 sps:$4 sm:$0xff]  }
  0x98   :  { %653 = vmatprep.mubr.bf16.mxu0 %v1531_v58  ;;  %696 = vmatprep.mubr.bf16.mxu1 %v1531_v58  ;;  %v1610_v58 = vld [vmem:[#allocation14 + $0xa0] ss:$8 sps:$4 sm:$0xff]  }
  0x9a   :  { %624 = vmatpush1.bf16.msra.mxu0 %v1921_v6  ;;  %667 = vmatpush1.bf16.msra.mxu1 %v1924_v7  ;;  %v1537_v6 = vld [vmem:[#allocation12 + $0x74] ss:$8 sps:$4 sm:$0xff]   ;;  %v1540_v7 = vld [vmem:[#allocation14 + $0x64] ss:$8 sps:$4 sm:$0xff]  }
  0x9b   :  { %625 = vmatprep.subr.bf16.mxu0 %v1927_v8  ;;  %668 = vmatprep.subr.bf16.mxu1 %v1929_v9  ;;  %v1543_v8 = vld [vmem:[#allocation12 + $0x64] ss:$8 sps:$4 sm:$0xff]   ;;  %v1538_v9 = vld [vmem:[#allocation14 + $0x60] ss:$8 sps:$4 sm:$0xff]  }
  0x9e   :  { %626 = vmatpush1.bf16.msra.mxu0 %v1931_v10  ;;  %669 = vmatpush1.bf16.msra.mxu1 %v1933_v11  ;;  %v1541_v10 = vld [vmem:[#allocation12 + $0x60] ss:$8 sps:$4 sm:$0xff]   ;;  %v1546_v11 = vld [vmem:[#allocation14 + $0x54] ss:$8 sps:$4 sm:$0xff]  }
  0x9f   :  { %627 = vmatprep.subr.bf16.mxu0 %v1937_v12  ;;  %670 = vmatprep.subr.bf16.mxu1 %v1941_v13  ;;  %v1549_v12 = vld [vmem:[#allocation12 + $0x54] ss:$8 sps:$4 sm:$0xff]   ;;  %v1544_v13 = vld [vmem:[#allocation14 + $0x50] ss:$8 sps:$4 sm:$0xff]  }
  0xa2   :  { %628 = vmatpush1.bf16.msra.mxu0 %v1943_v14  ;;  %671 = vmatpush1.bf16.msra.mxu1 %v1947_v15  ;;  %v1547_v14 = vld [vmem:[#allocation12 + $0x50] ss:$8 sps:$4 sm:$0xff]   ;;  %v1552_v15 = vld [vmem:[#allocation14 + $0x44] ss:$8 sps:$4 sm:$0xff]  }
  0xa3   :  { %629 = vmatprep.subr.bf16.mxu0 %v1949_v16  ;;  %672 = vmatprep.subr.bf16.mxu1 %v1953_v17  ;;  %v1555_v16 = vld [vmem:[#allocation12 + $0x44] ss:$8 sps:$4 sm:$0xff]   ;;  %v1550_v17 = vld [vmem:[#allocation14 + $0x40] ss:$8 sps:$4 sm:$0xff]  }
  0xa6   :  { %630 = vmatpush1.bf16.msra.mxu0 %v1955_v18  ;;  %673 = vmatpush1.bf16.msra.mxu1 %v1957_v19  ;;  %v1553_v18 = vld [vmem:[#allocation12 + $0x40] ss:$8 sps:$4 sm:$0xff]   ;;  %v1558_v19 = vld [vmem:[#allocation14 + $0x34] ss:$8 sps:$4 sm:$0xff]  }
  0xa7   :  { %631 = vmatprep.subr.bf16.mxu0 %v1961_v20  ;;  %674 = vmatprep.subr.bf16.mxu1 %v1965_v21  ;;  %v1561_v20 = vld [vmem:[#allocation12 + $0x34] ss:$8 sps:$4 sm:$0xff]   ;;  %v1556_v21 = vld [vmem:[#allocation14 + $0x30] ss:$8 sps:$4 sm:$0xff]  }
  0xaa   :  { %632 = vmatpush1.bf16.msra.mxu0 %v1967_v22  ;;  %675 = vmatpush1.bf16.msra.mxu1 %v1971_v23  ;;  %v1559_v22 = vld [vmem:[#allocation12 + $0x30] ss:$8 sps:$4 sm:$0xff]   ;;  %v1564_v23 = vld [vmem:[#allocation14 + $0x24] ss:$8 sps:$4 sm:$0xff]  }
  0xab   :  { %633 = vmatprep.subr.bf16.mxu0 %v1973_v24  ;;  %676 = vmatprep.subr.bf16.mxu1 %v1977_v25  ;;  %v1567_v24 = vld [vmem:[#allocation12 + $0x24] ss:$8 sps:$4 sm:$0xff]   ;;  %v1562_v25 = vld [vmem:[#allocation14 + $0x20] ss:$8 sps:$4 sm:$0xff]  }
  0xae   :  { %634 = vmatpush1.bf16.msra.mxu0 %v1979_v26  ;;  %677 = vmatpush1.bf16.msra.mxu1 %v1981_v27  ;;  %v1565_v26 = vld [vmem:[#allocation12 + $0x20] ss:$8 sps:$4 sm:$0xff]   ;;  %v1570_v27 = vld [vmem:[#allocation14 + $0x14] ss:$8 sps:$4 sm:$0xff]  }
  0xaf   :  { %635 = vmatprep.subr.bf16.mxu0 %v1985_v28  ;;  %678 = vmatprep.subr.bf16.mxu1 %v1989_v29  ;;  %v1573_v28 = vld [vmem:[#allocation12 + $0x14] ss:$8 sps:$4 sm:$0xff]   ;;  %v1568_v29 = vld [vmem:[#allocation14 + $0x10] ss:$8 sps:$4 sm:$0xff]  }
  0xb2   :  { %636 = vmatpush1.bf16.msra.mxu0 %v1991_v30  ;;  %679 = vmatpush1.bf16.msra.mxu1 %v1995_v31  ;;  %v1571_v30 = vld [vmem:[#allocation12 + $0x10] ss:$8 sps:$4 sm:$0xff]   ;;  %v1576_v31 = vld [vmem:[#allocation14 + $0x4] ss:$8 sps:$4 sm:$0xff]  }
  0xb3   :  { %637 = vmatprep.subr.bf16.mxu0 %v1997_v32  ;;  %680 = vmatprep.subr.bf16.mxu1 %v2001_v33  ;;  %v1579_v32 = vld [vmem:[#allocation12 + $0x4] ss:$8 sps:$4 sm:$0xff]   ;;  %v1574_v33 = vld [vmem:[#allocation14] ss:$8 sps:$4 sm:$0xff]  }
  0xb6   :  { %638 = vmatpush2.bf16.msra.mxu0 %v2003_v34  ;;  %681 = vmatpush2.bf16.msra.mxu1 %v2005_v35  ;;  %v1577_v34 = vld [vmem:[#allocation12] ss:$8 sps:$4 sm:$0xff]   ;;  %v1582_v35 = vld [vmem:[#allocation14 + $0xf4] ss:$8 sps:$4 sm:$0xff]  }
  0xb7   :  { %639 = vmatprep.subr.bf16.mxu0 %v2009_v36  ;;  %682 = vmatprep.subr.bf16.mxu1 %v2013_v37  ;;  %v1585_v36 = vld [vmem:[#allocation12 + $0xf4] ss:$8 sps:$4 sm:$0xff]   ;;  %v1580_v37 = vld [vmem:[#allocation14 + $0xf0] ss:$8 sps:$4 sm:$0xff]  }
  0xba   :  { %640 = vmatpush2.bf16.msra.mxu0 %v2015_v38  ;;  %683 = vmatpush2.bf16.msra.mxu1 %v2019_v39  ;;  %v1583_v38 = vld [vmem:[#allocation12 + $0xf0] ss:$8 sps:$4 sm:$0xff]   ;;  %v1588_v39 = vld [vmem:[#allocation14 + $0xe4] ss:$8 sps:$4 sm:$0xff]  }
  0xbb   :  { %641 = vmatprep.subr.bf16.mxu0 %v2021_v40  ;;  %684 = vmatprep.subr.bf16.mxu1 %v2025_v41  ;;  %v1591_v40 = vld [vmem:[#allocation12 + $0xe4] ss:$8 sps:$4 sm:$0xff]   ;;  %v1586_v41 = vld [vmem:[#allocation14 + $0xe0] ss:$8 sps:$4 sm:$0xff]  }
  0xbe   :  { %642 = vmatpush2.bf16.msra.mxu0 %v2027_v42  ;;  %685 = vmatpush2.bf16.msra.mxu1 %v2029_v43  ;;  %v1589_v42 = vld [vmem:[#allocation12 + $0xe0] ss:$8 sps:$4 sm:$0xff]   ;;  %v1594_v43 = vld [vmem:[#allocation14 + $0xd4] ss:$8 sps:$4 sm:$0xff]  }
  0xbf   :  { %643 = vmatprep.subr.bf16.mxu0 %v2033_v44  ;;  %686 = vmatprep.subr.bf16.mxu1 %v2037_v45  ;;  %v1597_v44 = vld [vmem:[#allocation12 + $0xd4] ss:$8 sps:$4 sm:$0xff]   ;;  %v1592_v45 = vld [vmem:[#allocation14 + $0xd0] ss:$8 sps:$4 sm:$0xff]  }
  0xc2   :  { %644 = vmatpush2.bf16.msra.mxu0 %v2039_v46  ;;  %687 = vmatpush2.bf16.msra.mxu1 %v2041_v47  ;;  %v1595_v46 = vld [vmem:[#allocation12 + $0xd0] ss:$8 sps:$4 sm:$0xff]   ;;  %v1600_v47 = vld [vmem:[#allocation14 + $0xc4] ss:$8 sps:$4 sm:$0xff]  }
  0xc3   :  { %645 = vmatprep.subr.bf16.mxu0 %v2045_v49  ;;  %688 = vmatprep.subr.bf16.mxu1 %v2049_v50  ;;  %v1603_v49 = vld [vmem:[#allocation12 + $0xc4] ss:$8 sps:$4 sm:$0xff]   ;;  %v1598_v50 = vld [vmem:[#allocation14 + $0xc0] ss:$8 sps:$4 sm:$0xff]  }
  0xc6   :  { %646 = vmatpush2.bf16.msra.mxu0 %v2051_v51  ;;  %689 = vmatpush2.bf16.msra.mxu1 %v2053_v52  ;;  %v1601_v51 = vld [vmem:[#allocation12 + $0xc0] ss:$8 sps:$4 sm:$0xff]   ;;  %v1606_v52 = vld [vmem:[#allocation14 + $0xb4] ss:$8 sps:$4 sm:$0xff]  }
  0xc7   :  { %647 = vmatprep.subr.bf16.mxu0 %v2055_v53  ;;  %690 = vmatprep.subr.bf16.mxu1 %v2183_v0  ;;  %v1609_v53 = vld [vmem:[#allocation12 + $0xb4] ss:$8 sps:$4 sm:$0xff]   ;;  %v1624_v0 = vld [vmem:[#allocation14 + $0x84] ss:$8 sps:$4 sm:$0xff]  }
  0xca   :  { %648 = vmatpush2.bf16.msra.mxu0 %v2063_v55  ;;  %691 = vmatpush2.bf16.msra.mxu1 %v2065_v56  ;;  %v1607_v55 = vld [vmem:[#allocation12 + $0xb0] ss:$8 sps:$4 sm:$0xff]   ;;  %v1612_v56 = vld [vmem:[#allocation14 + $0xa4] ss:$8 sps:$4 sm:$0xff]  }
  0xcb   :  { %649 = vmatprep.subr.bf16.mxu0 %v2067_v57  ;;  %692 = vmatprep.subr.bf16.mxu1 %v2184_v1  ;;  %v1615_v57 = vld [vmem:[#allocation12 + $0xa4] ss:$8 sps:$4 sm:$0xff]   ;;  %v1625_v1 = vld [vmem:[#allocation12 + $0x80] ss:$8 sps:$4 sm:$0xff]  }
  0xce   :  { %650 = vmatpush2.bf16.msra.mxu0 %v2075_v59  ;;  %693 = vmatpush2.bf16.msra.mxu1 %v2077_v60  ;;  %v1613_v59 = vld [vmem:[#allocation12 + $0xa0] ss:$8 sps:$4 sm:$0xff]   ;;  %v1618_v60 = vld [vmem:[#allocation14 + $0x94] ss:$8 sps:$4 sm:$0xff]  }
  0xcf   :  { %651 = vmatprep.subr.bf16.mxu0 %v2079_v61  ;;  %694 = vmatprep.subr.bf16.mxu1 %v2081_v62  ;;  %v1621_v61 = vld [vmem:[#allocation12 + $0x94] ss:$8 sps:$4 sm:$0xff]   ;;  %v1616_v62 = vld [vmem:[#allocation14 + $0x90] ss:$8 sps:$4 sm:$0xff]  }
  0xd2   :  { %652 = vmatpush2.bf16.msra.mxu0 %v2087_v63  ;;  %695 = vmatpush2.bf16.msra.mxu1 %v2089_v48  ;;  %v1619_v63 = vld [vmem:[#allocation12 + $0x90] ss:$8 sps:$4 sm:$0xff]   ;;  %v1622_v48 = vld [vmem:[#allocation14 + $0x80] ss:$8 sps:$4 sm:$0xff]  }
  0xd3   :  { %1016 = vmatprep.subr.bf16.mxu0 %v1534_v4  ;;  %1219 = vmatprep.subr.bf16.mxu1 %v1537_v6  ;;  %v712_v4 = vld [vmem:[#allocation9 + $0x8] sm:$0xff]  ;;  %v711_v6 = vld [vmem:[#allocation9] sm:$0xff] }
  0xd5   :  { %654 = vmatmul.mubr.bf16.vlgmr.msra.gmra.mxu0 %v1529_v2  ;;  %697 = vmatmul.mubr.bf16.vlgmr.msra.gmra.mxu1 %v1529_v2  ;;  %v1627_v2 = vld [vmem:[#allocation12 + $0x84] ss:$8 sps:$4 sm:$0xff]  }
  0xd6   :  { %1017 = vmatpush1.bf16.msra.mxu0 %v1532_v3  ;;  %1220 = vmatpush1.bf16.msra.mxu1 %v1535_v5  ;;  %v708_v3 = vld [vmem:[#allocation8 + $0x8] sm:$0xff]  ;;  %v707_v5 = vld [vmem:[#allocation8] sm:$0xff] }
  0xd7   :  { %1018 = vmatprep.subr.bf16.mxu0 %v1540_v7  ;;  %1221 = vmatprep.subr.bf16.mxu1 %v1543_v8  ;;  %v709_v7 = vld [vmem:[#allocation8 + $0x10] sm:$0xff] }
  0xd8   :  { %v713_v8 = vld [vmem:[#allocation9 + $0x10] sm:$0xff] }
  0xda   :  { %1019 = vmatpush1.bf16.msra.mxu0 %v1538_v9  ;;  %1222 = vmatpush1.bf16.msra.mxu1 %v1541_v10  ;;  %v716_v9 = vmul.f32 %v708_v3, %v708_v3  ;;  %v720_v10 = vmul.f32 %v712_v4, %v712_v4 }
  0xdb   :  { %1020 = vmatprep.subr.bf16.mxu0 %v1546_v11  ;;  %1223 = vmatprep.subr.bf16.mxu1 %v1549_v12  ;;  %v710_v11 = vld [vmem:[#allocation8 + $0x18] sm:$0xff] }
  0xdc   :  { %v714_v12 = vld [vmem:[#allocation9 + $0x18] sm:$0xff] }
  0xde   :  { %1021 = vmatpush1.bf16.msra.mxu0 %v1544_v13  ;;  %1224 = vmatpush1.bf16.msra.mxu1 %v1547_v14  ;;  %v715_v13 = vmul.f32 %v707_v5, %v707_v5  ;;  %v719_v14 = vmul.f32 %v711_v6, %v711_v6 }
  0xdf   :  { %1022 = vmatprep.subr.bf16.mxu0 %v1552_v15  ;;  %1225 = vmatprep.subr.bf16.mxu1 %v1555_v16  ;;  %v717_v15 = vmul.f32 %v709_v7, %v709_v7  ;;  %v721_v16 = vmul.f32 %v713_v8, %v713_v8 }
  0xe2   :  { %1023 = vmatpush1.bf16.msra.mxu0 %v1550_v17  ;;  %1226 = vmatpush1.bf16.msra.mxu1 %v1553_v18  ;;  %v718_v17 = vmul.f32 %v710_v11, %v710_v11  ;;  %v722_v18 = vmul.f32 %v714_v12, %v714_v12 }
  0xe3   :  { %1024 = vmatprep.subr.bf16.mxu0 %v1558_v19  ;;  %1227 = vmatprep.subr.bf16.mxu1 %v1561_v20  ;;  %v724_v19 = vadd.f32 %v720_v10, %v716_v9  ;;  %v723_v20 = vadd.f32 %v719_v14, %v715_v13 }
  0xe6   :  { %1025 = vmatpush1.bf16.msra.mxu0 %v1556_v21  ;;  %1228 = vmatpush1.bf16.msra.mxu1 %v1559_v22  ;;  %v727_v21 = vstv %s2170_s0  ;;  %v725_v22 = vadd.f32 %v721_v16, %v717_v15  ;;  %s1817_s0 = smov [#allocation15]  }
  0xe7   :  { %1026 = vmatprep.subr.bf16.mxu0 %v1564_v23  ;;  %1229 = vmatprep.subr.bf16.mxu1 %v1567_v24  ;;  %v726_v23 = vadd.f32 %v722_v18, %v718_v17  ;;  %v729_v24 = vadd.f32 %v727_v21, %v724_v19  ;;  %s1271_s30 = sshll.u32 %s1817_s0, 4  ;;  %s1272_s30 = int_to_ptr.vmem [resolvable:$true] %s1271_s30 }
  0xe8   :  { %s1776_s9 = scalar_lea.vmem %s1272_s30, 512  ;;  %p1781_p8 = scmp.lt.s32.totalorder %s1272_s30, %s1272_s30 }
  0xe9   :  { %1628 = vrcp.f32 %v729_v24  ;;  %p1777_p7 = scmp.ne.s32.totalorder %s1272_s30, %s1776_s9  ;;  %p1782_p9 = scmp.lt.s32.totalorder %s1776_s9, %s1776_s9 }
  0xea   :  { %1027 = vmatpush1.bf16.msra.mxu0 %v1562_v25  ;;  %1230 = vmatpush1.bf16.msra.mxu1 %v1565_v26  ;;  %v728_v25 = vadd.f32 %v727_v21, %v723_v20  ;;  %v730_v26 = vadd.f32 %v727_v21, %v725_v22 }
  0xeb   :  { %1028 = vmatprep.subr.bf16.mxu0 %v1570_v27  ;;  %1231 = vmatprep.subr.bf16.mxu1 %v1573_v28  ;;  %v731_v27 = vadd.f32 %v727_v21, %v726_v23  ;;  %p1783_p10 = por %p1782_p9, %p1781_p8 }
  0xec   :  { %1630 = vrcp.f32 %v728_v25 }
  0xed   :  { %1632 = vrcp.f32 %v730_v26  ;;  %p1784_p11 = pnand %p1783_p10, %p1777_p7 }
  0xee   :  { %1029 = vmatpush1.bf16.msra.mxu0 %v1568_v29  ;;  %1232 = vmatpush1.bf16.msra.mxu1 %v1571_v30  ;;  %1634 = vrcp.f32 %v731_v27 }
  0xef   :  { %1030 = vmatprep.subr.bf16.mxu0 %v1576_v31  ;;  %1233 = vmatprep.subr.bf16.mxu1 %v1579_v32 }
  0xf2   :  { %1031 = vmatpush1.bf16.msra.mxu0 %v1574_v33  ;;  %1234 = vmatpush1.bf16.msra.mxu1 %v1577_v34 }
  0xf3   :  { %1032 = vmatprep.subr.bf16.mxu0 %v1582_v35  ;;  %1235 = vmatprep.subr.bf16.mxu1 %v1585_v36 }
  0xf6   :  { %1033 = vmatpush2.bf16.msra.mxu0 %v1580_v37  ;;  %1236 = vmatpush2.bf16.msra.mxu1 %v1583_v38  ;;  %v1629_v32 = vpop.eup %1628 }
  0xf7   :  { %1034 = vmatprep.subr.bf16.mxu0 %v1588_v39  ;;  %1237 = vmatprep.subr.bf16.mxu1 %v1591_v40  ;;  %v737_v38 = vmul.f32 %v1629_v32, %v708_v3  ;;  %v741_v39 = vmul.f32 %v1629_v32, %v712_v4 }
  0xf9   :  { %v1631_v33 = vpop.eup %1630 }
  0xfa   :  { %1035 = vmatpush2.bf16.msra.mxu0 %v1586_v41  ;;  %1238 = vmatpush2.bf16.msra.mxu1 %v1589_v42  ;;  %v1633_v36 = vpop.eup %1632  ;;  %v736_v40 = vmul.f32 %v1631_v33, %v707_v5  ;;  %v740_v41 = vmul.f32 %v1631_v33, %v711_v6 }
  0xfb   :  { %1036 = vmatprep.subr.bf16.mxu0 %v1594_v43  ;;  %1239 = vmatprep.subr.bf16.mxu1 %v1597_v44  ;;  %v1635_v37 = vpop.eup %1634  ;;  %v738_v42 = vmul.f32 %v1633_v36, %v709_v7  ;;  %v742_v43 = vmul.f32 %v1633_v36, %v713_v8 }
  0xfe   :  { %1037 = vmatpush2.bf16.msra.mxu0 %v1592_v45  ;;  %1240 = vmatpush2.bf16.msra.mxu1 %v1595_v46  ;;  %v739_v46 = vmul.f32 %v1635_v37, %v710_v11 }
  0xff   :  { %1038 = vmatprep.subr.bf16.mxu0 %v1600_v47  ;;  %1241 = vmatprep.subr.bf16.mxu1 %v1603_v49  ;;  %v743_v47 = vmul.f32 %v1635_v37, %v714_v12  ;;  %v744_v49 = vmul.f32 %v1631_v33, %v727_v21 }
 0x102   :  { %1039 = vmatpush2.bf16.msra.mxu0 %v1598_v50  ;;  %1242 = vmatpush2.bf16.msra.mxu1 %v1601_v51  ;;  %v745_v50 = vmul.f32 %v1629_v32, %v727_v21 }
 0x103   :  { %1040 = vmatprep.subr.bf16.mxu0 %v1606_v52  ;;  %1243 = vmatprep.subr.bf16.mxu1 %v1609_v53 }
 0x106   :  { %1041 = vmatpush2.bf16.msra.mxu0 %v1604_v54  ;;  %1244 = vmatpush2.bf16.msra.mxu1 %v1607_v55 }
 0x107   :  { %1042 = vmatprep.subr.bf16.mxu0 %v1612_v56  ;;  %1245 = vmatprep.subr.bf16.mxu1 %v1615_v57 }
 0x10a   :  { %1043 = vmatpush2.bf16.msra.mxu0 %v1610_v58  ;;  %1246 = vmatpush2.bf16.msra.mxu1 %v1613_v59  ;;  %v746_v59 = vmul.f32 %v1633_v36, %v727_v21 }
 0x10b   :  { %1044 = vmatprep.subr.bf16.mxu0 %v1618_v60  ;;  %1247 = vmatprep.subr.bf16.mxu1 %v1621_v61  ;;  %v747_v60 = vmul.f32 %v1635_v37, %v727_v21 }
 0x10e   :  { %1045 = vmatpush2.bf16.msra.mxu0 %v1616_v62  ;;  %1248 = vmatpush2.bf16.msra.mxu1 %v1619_v63 }
 0x10f   :  { %1046 = vmatprep.subr.bf16.mxu0 %v1624_v0  ;;  %1249 = vmatprep.subr.bf16.mxu1 %v1627_v2 }
 0x112   :  { %1047 = vmatpush2.bf16.msra.mxu0 %v1622_v48  ;;  %1250 = vmatpush2.bf16.msra.mxu1 %v1625_v1 }
 0x155   :  { %v557_v28 = vpop.f32.mrf.mxu0  ;;  %v600_v29 = vpop.f32.mrf.mxu1 }
 0x156   :  { %v748_v57 = vmul.f32 %v736_v40, %v557_v28  ;;  %v772_v58 = vmul.f32 %v740_v41, %v557_v28  ;;  %v752_v6 = vmul.f32 %v740_v41, %v600_v29  ;;  %v768_v7 = vmul.f32 %v736_v40, %v600_v29 }
 0x157   :  { %v559_v30 = vpop.f32.mrf.mxu0  ;;  %v602_v31 = vpop.f32.mrf.mxu1 }
 0x158   :  { %v749_v51 = vmul.f32 %v737_v38, %v559_v30  ;;  %v773_v52 = vmul.f32 %v741_v39, %v559_v30  ;;  %v753_v53 = vmul.f32 %v741_v39, %v602_v31  ;;  %v769_v54 = vmul.f32 %v737_v38, %v602_v31 }
 0x159   :  { %v561_v34 = vpop.f32.mrf.mxu0  ;;  %v604_v35 = vpop.f32.mrf.mxu1  ;;  %v756_v26 = vadd.f32 %v752_v6, %v748_v57  ;;  %v776_v27 = vsub.f32 %v768_v7, %v772_v58 }
 0x15a   :  { %v750_v61 = vmul.f32 %v738_v42, %v561_v34  ;;  %v774_v62 = vmul.f32 %v742_v43, %v561_v34  ;;  %v754_v63 = vmul.f32 %v742_v43, %v604_v35  ;;  %v770_v48 = vmul.f32 %v738_v42, %v604_v35 }
 0x15b   :  { %v563_v44 = vpop.f32.mrf.mxu0  ;;  %v606_v45 = vpop.f32.mrf.mxu1  ;;  %v757_v8 = vadd.f32 %v753_v53, %v749_v51  ;;  %v777_v9 = vsub.f32 %v769_v54, %v773_v52 }
 0x15c   :  { %v751_v2 = vmul.f32 %v739_v46, %v563_v44  ;;  %v775_v3 = vmul.f32 %v743_v47, %v563_v44  ;;  %v755_v4 = vmul.f32 %v743_v47, %v606_v45  ;;  %v771_v5 = vmul.f32 %v739_v46, %v606_v45 }
 0x15d   :  { %v758_v16 = vadd.f32 %v754_v63, %v750_v61  ;;  %v778_v17 = vsub.f32 %v770_v48, %v774_v62 }
 0x15e   :  { %v759_v22 = vadd.f32 %v755_v4, %v751_v2  ;;  %v779_v23 = vsub.f32 %v771_v5, %v775_v3 }
 0x195   :  { %v655_v55 = vpop.f32.mrf.mxu0  ;;  %v698_v56 = vpop.f32.mrf.mxu1 }
 0x196   :  { %v760_v18 = vmul.f32 %v744_v49, %v655_v55  ;;  %v780_v19 = vmul.f32 %v744_v49, %v698_v56 }
 0x197   :  { %v657_v0 = vpop.f32.mrf.mxu0  ;;  %v700_v1 = vpop.f32.mrf.mxu1 }
 0x198   :  { %v761_v12 = vmul.f32 %v745_v50, %v657_v0  ;;  %v781_v13 = vmul.f32 %v745_v50, %v700_v1  ;;  %v764_v34 = vadd.f32 %v760_v18, %v756_v26  ;;  %v784_v35 = vadd.f32 %v780_v19, %v776_v27 }
 0x199   :  { %v659_v10 = vpop.f32.mrf.mxu0  ;;  %v702_v11 = vpop.f32.mrf.mxu1 }
 0x19a   :  { %v762_v14 = vmul.f32 %v746_v59, %v659_v10  ;;  %v782_v15 = vmul.f32 %v746_v59, %v702_v11  ;;  %v765_v30 = vadd.f32 %v761_v12, %v757_v8  ;;  %v785_v31 = vadd.f32 %v781_v13, %v777_v9 }
 0x19b   :  { %v661_v20 = vpop.f32.mrf.mxu0  ;;  %v704_v21 = vpop.f32.mrf.mxu1 }
 0x19c   :  { %v763_v24 = vmul.f32 %v747_v60, %v661_v20  ;;  %v783_v25 = vmul.f32 %v747_v60, %v704_v21  ;;  %v766_v28 = vadd.f32 %v762_v14, %v758_v16  ;;  %v786_v29 = vadd.f32 %v782_v15, %v778_v17 }
 0x19e   :  { %v767_v32 = vadd.f32 %v763_v24, %v759_v22  ;;  %v787_v33 = vadd.f32 %v783_v25, %v779_v23  ;;  %v788_v38 = vpack.c.bf16 %v766_v28, %v764_v34  ;;  %v822_v39 = vpack.c.bf16 %v786_v29, %v784_v35 }
 0x1a0   :  { %v823_v36 = vpack.c.bf16 %v787_v33, %v785_v31  ;;  %v789_v37 = vpack.c.bf16 %v767_v32, %v765_v30 }
 0x1a2   :  { %1048 = vmatprep.mubr.bf16.mxu0 %v823_v36  ;;  %1251 = vmatprep.mubr.bf16.mxu1 %v789_v37 }
 0x1a3   :  { %1049 = vmatmul.mubr.bf16.vlgmr.msra.gmra.mxu0 %v822_v39  ;;  %1252 = vmatmul.mubr.bf16.vlgmr.msra.gmra.mxu1 %v788_v38 }
 0x263   :  { %v1050_v40 = vpop.f32.mrf.mxu0  ;;  %v1253_v41 = vpop.f32.mrf.mxu1 }
 0x264   :  { %v1254_v42 = vadd.f32 %v1253_v41, %v1050_v40 }
 0x265   :  { %v1052_v43 = vpop.f32.mrf.mxu0  ;;  %v1255_v44 = vpop.f32.mrf.mxu1 }
 0x266   :  { %1262 = vst [vmem:[#allocation15] sm:$0xff] %v1254_v42  ;;  %v1256_v45 = vadd.f32 %v1255_v44, %v1052_v43 }
 0x267   :  { %v1054_v46 = vpop.f32.mrf.mxu0  ;;  %v1257_v47 = vpop.f32.mrf.mxu1 }
 0x268   :  { %1263 = vst [vmem:[#allocation15 + $0x8] sm:$0xff] %v1256_v45  ;;  %v1258_v49 = vadd.f32 %v1257_v47, %v1054_v46 }
 0x269   :  { %v1056_v50 = vpop.f32.mrf.mxu0  ;;  %v1259_v51 = vpop.f32.mrf.mxu1 }
 0x26a   :  { %1264 = vst [vmem:[#allocation15 + $0x10] sm:$0xff] %v1258_v49  ;;  %v1260_v52 = vadd.f32 %v1259_v51, %v1056_v50 }
 0x26c   :  { %1265 = vst [vmem:[#allocation15 + $0x18] sm:$0xff] %v1260_v52 }
 0x26d   :  { %1787 = shalt.err (!%p1784_p11)
}
 0x26e   :  { %1277 = dma.vmem_to_hbm [thread:$0]  %s1272_s30, 512, %s2178_s8, [#allocation5], %s1811_s17, %s1811_s17, %s1812_s18  }
 0x26f   :  { %1804 = dma.done.wait [#allocation5], 512  }
 0x270   :  { %1805 = vsyncadd [#allocation5], 4294966784 }
 0x271   :  { %1281 = vsyncpa [#allocation4], 1 }
 0x272   :  { %1282 = vsyncpa [#allocation7], 1 }
 0x273   :  { %1283 = vsyncpa [#allocation10], 1 }
 0x274   :  { %1284 = vsyncpa [#allocation13], 1 }
 0x275   :  { %1285 = vsyncpa [#allocation5], 1 }

</bundles_post_ra>
